<compile_context>
chip_gen: v6e
topology: v6e:2x2x1
jax: 0.10.0
libtpu: 0.0.40
codegen_flags: <defaults>
</compile_context>

<pallas_src>
import functools

import jax
import jax.numpy as jnp
import numpy as np
from jax.experimental import pallas as pl
from jax.experimental.pallas import tpu as pltpu

EPS = 1e-6  # same epsilon as the VN nonlinearities


def _vn_deepset_kernel(xk_ref, at_ref, xi_ref, wik_ref, wpk_ref, b3_ref, o_ref,
                       acc_ref, *, cout, negative_slope):
    """One (node-tile, source-tile) step of the VNDeepSetLayer forward.

    Layout: channels (component-major) on the sublane axis, NODES on the 128-lane axis.

    xk_ref : (3*Cin, tile_k)   pooling-source slab for this reduction step (f32)
    at_ref : (tile_k, tile_n)  A^T block (bf16); A^T[s, t] = #edges s->t
    xi_ref : (3*Cin, tile_n)   this node tile of x (identity + residual path)
    wik_ref: (6*Cout, 3*Cin)   [kron(I3, Wi); kron(I3, Wd@Wi)]
    wpk_ref: (6*Cout, 3*Cin)   [kron(I3, Wp); kron(I3, Wd@Wp)]
    b3_ref : (6*Cout, 1)       [b;b;b; Wd@b;Wd@b;Wd@b],  b = bi + bp
    o_ref  : (3*Cout, tile_n)
    acc_ref: (3*Cin, tile_n)   f32 scratch accumulator: pooled = sum_s x[:, s] * A^T[s, tile]
    """
    k = pl.program_id(1)

    @pl.when(k == 0)
    def _init():
        acc_ref[...] = jnp.zeros_like(acc_ref)

    # Dominant matmul: scatter-sum pooling as a dense contraction over source nodes.
    # bf16 A^T is exact for small integer counts; upcast keeps the accumulation in f32.
    acc_ref[...] += jnp.dot(xk_ref[...], at_ref[...].astype(jnp.float32),
                            preferred_element_type=jnp.float32)

    @pl.when(k == pl.num_programs(1) - 1)
    def _epilogue():
        c = cout
        x_blk = xi_ref[...]                                             # (3*Cin, TN)

        # Stacked weights: rows [:3c] -> y, rows [3c:] -> dm = Wd @ y, in two MXU pushes.
        ydm = (jnp.dot(wik_ref[...], x_blk, preferred_element_type=jnp.float32)
               + jnp.dot(wpk_ref[...], acc_ref[...], preferred_element_type=jnp.float32)
               + b3_ref[...])
        y = ydm[:3 * c]                                                 # (3*Cout, TN)
        dm = ydm[3 * c:]                                                # (3*Cout, TN)

        # VNLeakyReLU: reductions over the 3 vector components (component-major row blocks).
        yd = y * dm
        d2 = dm * dm
        dot = yd[:c] + yd[c:2 * c] + yd[2 * c:]                         # (Cout, TN)
        dsq = d2[:c] + d2[c:2 * c] + d2[2 * c:]                         # (Cout, TN)
        t = dsq + EPS
        inv = pl.reciprocal(t, approx=True)        # EUP slot
        inv = inv * (2.0 - t * inv)                # one Newton-Raphson step -> ~f32 accurate

        # out = ns*y + (1-ns)*(mask*y + (1-mask)*(y - (dot/(dsq+eps))*dm)) == y - coef*dm
        coef = jnp.where(dot < 0.0, (1.0 - negative_slope) * dot * inv, 0.0)
        coef3 = jnp.concatenate([coef, coef, coef], axis=0)             # (3*Cout, TN)

        # dropout=0.0 (eval) -> identity; residual add (requires Cin == Cout).
        o_ref[...] = y - coef3 * dm + x_blk


def vn_deepset_layer(x, edges, params, *, negative_slope=0.2, tile_n=128, tile_k=None):
    """x: (N, 3, Cin) float32 (PyTorch layout); edges: (2, E) int32.

    Returns (output (N, 3, Cout), edges), matching the PyTorch module forward.
    """
    N, three, Cin = x.shape
    assert three == 3
    Wi, bi, Wp, bp, Wd = params          # torch shapes: (Co,Ci),(Co,),(Co,Ci),(Co,),(Co,Co)
    Cout = Wi.shape[0]
    assert Cin == Cout, "residual connection requires in_channels == out_channels"

    tile_n = min(tile_n, N)
    assert N % tile_n == 0, "N must be a multiple of tile_n"
    if tile_k is None:
        tile_k = N if N <= 2048 else 2048
    tile_k = min(tile_k, N)
    assert N % tile_k == 0, "N must be a multiple of tile_k"

    hp = jax.lax.Precision.HIGHEST

    # Dense transposed adjacency (reduce='sum', dim_size=N): A^T[s, t] = #edges s->t.
    # Stored bf16 (counts <= 255 exact) to halve the dominant O(N^2) HBM stream.
    e_src, e_dst = edges[0], edges[1]
    at = jnp.zeros((N, N), jnp.float32).at[e_src, e_dst].add(1.0).astype(jnp.bfloat16)

    # Kernel layout: component-major channel stacking on sublanes, nodes on lanes.
    x_k = jnp.transpose(x.astype(jnp.float32), (1, 2, 0)).reshape(3 * Cin, N)

    Wi_ = jnp.asarray(Wi, jnp.float32)
    Wp_ = jnp.asarray(Wp, jnp.float32)
    Wd_ = jnp.asarray(Wd, jnp.float32)
    bsum = jnp.asarray(bi, jnp.float32) + jnp.asarray(bp, jnp.float32)

    # Precompose the VN direction map into the linear weights (full f32 precision).
    eye3 = jnp.eye(3, dtype=jnp.float32)
    wd_wi = jnp.dot(Wd_, Wi_, precision=hp)
    wd_wp = jnp.dot(Wd_, Wp_, precision=hp)
    wd_b = jnp.dot(Wd_, bsum, precision=hp)
    wik = jnp.concatenate([jnp.kron(eye3, Wi_), jnp.kron(eye3, wd_wi)], axis=0)  # (6Co, 3Ci)
    wpk = jnp.concatenate([jnp.kron(eye3, Wp_), jnp.kron(eye3, wd_wp)], axis=0)  # (6Co, 3Ci)
    b3 = jnp.concatenate([jnp.tile(bsum, 3), jnp.tile(wd_b, 3)])[:, None]        # (6Co, 1)

    # Grid: node tiles (parallel, >=2 steps so both v7x TCs get work) x source tiles
    # (reduction axis, last by convention, accumulated in VMEM scratch).
    grid = (N // tile_n, N // tile_k)

    flops = 2 * (3 * Cin) * N * N + 2 * 2 * (6 * Cout) * (3 * Cin) * N
    bytes_accessed = N * N * 2 + 2 * (3 * Cin) * N * 4 + (3 * Cout) * N * 4

    out = pl.pallas_call(
        functools.partial(_vn_deepset_kernel, cout=Cout,
                          negative_slope=negative_slope),
        out_shape=jax.ShapeDtypeStruct((3 * Cout, N), jnp.float32),
        grid=grid,
        in_specs=[
            pl.BlockSpec((3 * Cin, tile_k), lambda i, k: (0, k)),     # x, pooling sources
            pl.BlockSpec((tile_k, tile_n), lambda i, k: (k, i)),      # A^T block (bf16)
            pl.BlockSpec((3 * Cin, tile_n), lambda i, k: (0, i)),     # x, identity/residual
            pl.BlockSpec((6 * Cout, 3 * Cin), lambda i, k: (0, 0)),   # stacked identity weights
            pl.BlockSpec((6 * Cout, 3 * Cin), lambda i, k: (0, 0)),   # stacked pooling weights
            pl.BlockSpec((6 * Cout, 1), lambda i, k: (0, 0)),         # stacked bias
        ],
        out_specs=pl.BlockSpec((3 * Cout, tile_n), lambda i, k: (0, i)),
        scratch_shapes=[pltpu.VMEM((3 * Cin, tile_n), jnp.float32)],
        compiler_params=pltpu.CompilerParams(
            dimension_semantics=("parallel", "arbitrary")),
        cost_estimate=pl.CostEstimate(flops=flops, transcendentals=Cout * N,
                                      bytes_accessed=bytes_accessed),
    )(x_k, at, x_k, wik, wpk, b3)

    # (3*Cout, N) -> (N, 3, Cout), back to the PyTorch layout.
    return jnp.transpose(out.reshape(3, Cout, N), (2, 0, 1)), edges


def reference_forward(x, edges, params, negative_slope):
    """Pure-JAX re-implementation of the PyTorch forward (for verification)."""
    Wi, bi, Wp, bp, Wd = params
    e_src, e_dst = edges[0], edges[1]
    identity = x @ Wi.T + bi                                  # (N, 3, Cout)
    nodes_1 = x[e_src]
    pooled = jnp.zeros_like(x).at[e_dst].add(nodes_1)         # scatter reduce='sum'
    pooling = pooled @ Wp.T + bp
    y = identity + pooling
    yt = jnp.swapaxes(y, 1, -1)                               # (N, Cout, 3)
    d = jnp.swapaxes(jnp.swapaxes(yt, 1, -1) @ Wd.T, 1, -1)   # VNLeakyReLU map_to_dir
    dot = jnp.sum(yt * d, axis=2, keepdims=True)
    mask = (dot >= 0).astype(yt.dtype)
    dsq = jnp.sum(d * d, axis=2, keepdims=True)
    ns = negative_slope
    out = ns * yt + (1 - ns) * (mask * yt + (1 - mask) * (yt - (dot / (dsq + EPS)) * d))
    out = jnp.swapaxes(out, 1, -1)
    return out + x, edges


if __name__ == "__main__":
    key = jax.random.PRNGKey(0)
    N, C = 256, 16                       # nodes, channels (in == out for residual)
    k1, k2, k3, k4, k5, k6 = jax.random.split(key, 6)

    x = jax.random.normal(k1, (N, 3, C), jnp.float32)

    # Ring graph with self-loops: node i receives from {i-1, i, i+1}.
    src, dst = [], []
    for i in range(N):
        for j in (i, (i - 1) % N, (i + 1) % N):
            src.append(j)
            dst.append(i)
    edges = jnp.array([src, dst], jnp.int32)   # (2, E)

    # Deterministic parameter init (nn.Linear-style uniform bounds).
    bound = 1.0 / np.sqrt(C)
    Wi = jax.random.uniform(k2, (C, C), jnp.float32, -bound, bound)
    bi = jax.random.uniform(k3, (C,), jnp.float32, -bound, bound)
    Wp = jax.random.uniform(k4, (C, C), jnp.float32, -bound, bound)
    bp = jax.random.uniform(k5, (C,), jnp.float32, -bound, bound)
    Wd = jax.random.uniform(k6, (C, C), jnp.float32, -bound, bound)
    params = (Wi, bi, Wp, bp, Wd)

    out, _ = vn_deepset_layer(x, edges, params, negative_slope=0.2, tile_n=128)
    out = jax.block_until_ready(out)

    # Run the pure-JAX reference at full f32 matmul precision (the TPU default uses bf16
    # MXU passes) so the comparison measures kernel error rather than reference rounding.
    with jax.default_matmul_precision("highest"):
        ref, _ = reference_forward(x, edges, params, 0.2)
        ref = jax.block_until_ready(ref)

    # Newton-Raphson-refined reciprocal lets us tighten the tolerance vs the previous 5e-3.
    np.testing.assert_allclose(np.asarray(out), np.asarray(ref), rtol=2e-3, atol=2e-3)
    print("KERNEL_OK")
</pallas_src>

<mosaic_0001>
module attributes {stable_mosaic.version = 11 : i64} {
  func.func @_vn_deepset_kernel(%arg0: i32, %arg1: i32, %arg2: memref<48x256xf32, #tpu.memory_space<vmem>>, %arg3: memref<256x128xbf16, #tpu.memory_space<vmem>>, %arg4: memref<48x128xf32, #tpu.memory_space<vmem>>, %arg5: memref<96x48xf32, #tpu.memory_space<vmem>>, %arg6: memref<96x48xf32, #tpu.memory_space<vmem>>, %arg7: memref<96x1xf32, #tpu.memory_space<vmem>>, %arg8: memref<48x128xf32, #tpu.memory_space<vmem>>, %arg9: memref<48x128xf32, #tpu.memory_space<vmem>>) attributes {dimension_semantics = [#tpu.dimension_semantics<parallel>, #tpu.dimension_semantics<arbitrary>], iteration_bounds = array<i64: 2, 1>, scalar_prefetch = 0 : i64, scratch_operands = 1 : i64, tpu.core_type = #tpu.core_type<tc>, window_params = [{transform_indices = @transform_0, window_bounds = array<i64: 48, 256>}, {transform_indices = @transform_1, window_bounds = array<i64: 256, 128>}, {transform_indices = @transform_2, window_bounds = array<i64: 48, 128>}, {pipeline_mode = #tpu.pipeline_mode<synchronous>, transform_indices = @transform_3, window_bounds = array<i64: 96, 48>}, {pipeline_mode = #tpu.pipeline_mode<synchronous>, transform_indices = @transform_4, window_bounds = array<i64: 96, 48>}, {pipeline_mode = #tpu.pipeline_mode<synchronous>, transform_indices = @transform_5, window_bounds = array<i64: 96, 1>}, {transform_indices = @transform_6, window_bounds = array<i64: 48, 128>}]} {
    %c0_i32 = arith.constant 0 : i32
    %0 = arith.cmpi eq, %arg1, %c0_i32 : i32
    %1 = arith.extui %0 : i1 to i32
    %c0_i32_0 = arith.constant 0 : i32
    %2 = arith.cmpi ne, %1, %c0_i32_0 : i32
    scf.if %2 {
      %cst_10 = arith.constant 0.000000e+00 : f32
      %13 = vector.broadcast %cst_10 : f32 to vector<48x128xf32>
      %c0_11 = arith.constant 0 : index
      %c0_12 = arith.constant 0 : index
      %14 = vector.load %arg9[%c0_11, %c0_12] : memref<48x128xf32, #tpu.memory_space<vmem>>, vector<48x128xf32>
      tpu.vector_store %arg9[%c0_11, %c0_12], %13 {strides = array<i32>} : memref<48x128xf32, #tpu.memory_space<vmem>>, vector<48x128xf32>,
    } else {
    }
    %c0 = arith.constant 0 : index
    %c0_1 = arith.constant 0 : index
    %3 = vector.load %arg9[%c0, %c0_1] : memref<48x128xf32, #tpu.memory_space<vmem>>, vector<48x128xf32>
    %c0_2 = arith.constant 0 : index
    %c0_3 = arith.constant 0 : index
    %4 = vector.load %arg2[%c0_2, %c0_3] : memref<48x256xf32, #tpu.memory_space<vmem>>, vector<48x256xf32>
    %c0_4 = arith.constant 0 : index
    %c0_5 = arith.constant 0 : index
    %5 = vector.load %arg3[%c0_4, %c0_5] : memref<256x128xbf16, #tpu.memory_space<vmem>>, vector<256x128xbf16>
    %6 = arith.extf %5 : vector<256x128xbf16> to vector<256x128xf32>
    %cst = arith.constant dense<0.000000e+00> : vector<48x128xf32>
    %7 = tpu.matmul %4, %6, %cst {dimension_numbers = #tpu.dot_dimension_numbers<[1], [0], [0], [1], [0, 0, 1, 1], [], []>} : vector<48x256xf32>, vector<256x128xf32>, vector<48x128xf32> -> vector<48x128xf32>
    %8 = arith.addf %3, %7 : vector<48x128xf32>
    %c0_6 = arith.constant 0 : index
    %c0_7 = arith.constant 0 : index
    %9 = vector.load %arg9[%c0_6, %c0_7] : memref<48x128xf32, #tpu.memory_space<vmem>>, vector<48x128xf32>
    tpu.vector_store %arg9[%c0_6, %c0_7], %8 {strides = array<i32>} : memref<48x128xf32, #tpu.memory_space<vmem>>, vector<48x128xf32>,
    %c0_i32_8 = arith.constant 0 : i32
    %10 = arith.cmpi eq, %arg1, %c0_i32_8 : i32
    %11 = arith.extui %10 : i1 to i32
    %c0_i32_9 = arith.constant 0 : i32
    %12 = arith.cmpi ne, %11, %c0_i32_9 : i32
    scf.if %12 {
      %c0_10 = arith.constant 0 : index
      %c0_11 = arith.constant 0 : index
      %13 = vector.load %arg4[%c0_10, %c0_11] : memref<48x128xf32, #tpu.memory_space<vmem>>, vector<48x128xf32>
      %c0_12 = arith.constant 0 : index
      %c0_13 = arith.constant 0 : index
      %14 = vector.load %arg5[%c0_12, %c0_13] : memref<96x48xf32, #tpu.memory_space<vmem>>, vector<96x48xf32>
      %cst_14 = arith.constant dense<0.000000e+00> : vector<96x128xf32>
      %15 = tpu.matmul %14, %13, %cst_14 {dimension_numbers = #tpu.dot_dimension_numbers<[1], [0], [0], [1], [0, 0, 1, 1], [], []>} : vector<96x48xf32>, vector<48x128xf32>, vector<96x128xf32> -> vector<96x128xf32>
      %c0_15 = arith.constant 0 : index
      %c0_16 = arith.constant 0 : index
      %16 = vector.load %arg6[%c0_15, %c0_16] : memref<96x48xf32, #tpu.memory_space<vmem>>, vector<96x48xf32>
      %c0_17 = arith.constant 0 : index
      %c0_18 = arith.constant 0 : index
      %17 = vector.load %arg9[%c0_17, %c0_18] : memref<48x128xf32, #tpu.memory_space<vmem>>, vector<48x128xf32>
      %cst_19 = arith.constant dense<0.000000e+00> : vector<96x128xf32>
      %18 = tpu.matmul %16, %17, %cst_19 {dimension_numbers = #tpu.dot_dimension_numbers<[1], [0], [0], [1], [0, 0, 1, 1], [], []>} : vector<96x48xf32>, vector<48x128xf32>, vector<96x128xf32> -> vector<96x128xf32>
      %19 = arith.addf %15, %18 : vector<96x128xf32>
      %c0_20 = arith.constant 0 : index
      %c0_21 = arith.constant 0 : index
      %20 = vector.load %arg7[%c0_20, %c0_21] : memref<96x1xf32, #tpu.memory_space<vmem>>, vector<96x1xf32>
      %21 = vector.broadcast %20 : vector<96x1xf32> to vector<96x128xf32>
      %22 = arith.addf %19, %21 : vector<96x128xf32>
      %23 = vector.extract_strided_slice %22 {offsets = [0, 0], sizes = [48, 128], strides = [1, 1]} : vector<96x128xf32> to vector<48x128xf32>
      %24 = vector.extract_strided_slice %22 {offsets = [48, 0], sizes = [48, 128], strides = [1, 1]} : vector<96x128xf32> to vector<48x128xf32>
      %25 = arith.mulf %23, %24 : vector<48x128xf32>
      %26 = arith.mulf %24, %24 : vector<48x128xf32>
      %27 = vector.extract_strided_slice %25 {offsets = [0, 0], sizes = [16, 128], strides = [1, 1]} : vector<48x128xf32> to vector<16x128xf32>
      %28 = vector.extract_strided_slice %25 {offsets = [16, 0], sizes = [16, 128], strides = [1, 1]} : vector<48x128xf32> to vector<16x128xf32>
      %29 = arith.addf %27, %28 : vector<16x128xf32>
      %30 = vector.extract_strided_slice %25 {offsets = [32, 0], sizes = [16, 128], strides = [1, 1]} : vector<48x128xf32> to vector<16x128xf32>
      %31 = arith.addf %29, %30 : vector<16x128xf32>
      %32 = vector.extract_strided_slice %26 {offsets = [0, 0], sizes = [16, 128], strides = [1, 1]} : vector<48x128xf32> to vector<16x128xf32>
      %33 = vector.extract_strided_slice %26 {offsets = [16, 0], sizes = [16, 128], strides = [1, 1]} : vector<48x128xf32> to vector<16x128xf32>
      %34 = arith.addf %32, %33 : vector<16x128xf32>
      %35 = vector.extract_strided_slice %26 {offsets = [32, 0], sizes = [16, 128], strides = [1, 1]} : vector<48x128xf32> to vector<16x128xf32>
      %36 = arith.addf %34, %35 : vector<16x128xf32>
      %cst_22 = arith.constant 9.99999997E-7 : f32
      %37 = vector.broadcast %cst_22 : f32 to vector<16x128xf32>
      %38 = arith.addf %36, %37 : vector<16x128xf32>
      %39 = tpu.reciprocal %38 {approx = true} : vector<16x128xf32> -> vector<16x128xf32>
      %40 = arith.mulf %38, %39 : vector<16x128xf32>
      %cst_23 = arith.constant 2.000000e+00 : f32
      %41 = vector.broadcast %cst_23 : f32 to vector<16x128xf32>
      %42 = arith.subf %41, %40 : vector<16x128xf32>
      %43 = arith.mulf %39, %42 : vector<16x128xf32>
      %cst_24 = arith.constant 0.000000e+00 : f32
      %44 = vector.broadcast %cst_24 : f32 to vector<16x128xf32>
      %45 = arith.cmpf olt, %31, %44 : vector<16x128xf32>
      %cst_25 = arith.constant 8.000000e-01 : f32
      %46 = vector.broadcast %cst_25 : f32 to vector<16x128xf32>
      %47 = arith.mulf %46, %31 : vector<16x128xf32>
      %48 = arith.mulf %47, %43 : vector<16x128xf32>
      %cst_26 = arith.constant 0.000000e+00 : f32
      %49 = vector.broadcast %cst_26 : f32 to vector<16x128xf32>
      %50 = arith.select %45, %48, %49 : vector<16x128xi1>, vector<16x128xf32>
      %51 = tpu.concatenate %50, %50, %50 in 0 : vector<16x128xf32>, vector<16x128xf32>, vector<16x128xf32> -> vector<48x128xf32>
      %52 = arith.mulf %51, %24 : vector<48x128xf32>
      %53 = arith.subf %23, %52 : vector<48x128xf32>
      %54 = arith.addf %53, %13 : vector<48x128xf32>
      %c0_27 = arith.constant 0 : index
      %c0_28 = arith.constant 0 : index
      %55 = vector.load %arg8[%c0_27, %c0_28] : memref<48x128xf32, #tpu.memory_space<vmem>>, vector<48x128xf32>
      tpu.vector_store %arg8[%c0_27, %c0_28], %54 {strides = array<i32>} : memref<48x128xf32, #tpu.memory_space<vmem>>, vector<48x128xf32>,
    } else {
    }
    return
  }
  func.func @transform_0(%arg0: i32, %arg1: i32) -> (i32, i32) {
    %c0_i32 = arith.constant 0 : i32
    %c0_i32_0 = arith.constant 0 : i32
    return %c0_i32, %arg1 : i32, i32
  }
  func.func @transform_1(%arg0: i32, %arg1: i32) -> (i32, i32) {
    %c0_i32 = arith.constant 0 : i32
    return %arg1, %arg0 : i32, i32
  }
  func.func @transform_2(%arg0: i32, %arg1: i32) -> (i32, i32) {
    %c0_i32 = arith.constant 0 : i32
    %c0_i32_0 = arith.constant 0 : i32
    return %c0_i32, %arg0 : i32, i32
  }
  func.func @transform_3(%arg0: i32, %arg1: i32) -> (i32, i32) {
    %c0_i32 = arith.constant 0 : i32
    %c0_i32_0 = arith.constant 0 : i32
    %c0_i32_1 = arith.constant 0 : i32
    return %c0_i32, %c0_i32_0 : i32, i32
  }
  func.func @transform_4(%arg0: i32, %arg1: i32) -> (i32, i32) {
    %c0_i32 = arith.constant 0 : i32
    %c0_i32_0 = arith.constant 0 : i32
    %c0_i32_1 = arith.constant 0 : i32
    return %c0_i32, %c0_i32_0 : i32, i32
  }
  func.func @transform_5(%arg0: i32, %arg1: i32) -> (i32, i32) {
    %c0_i32 = arith.constant 0 : i32
    %c0_i32_0 = arith.constant 0 : i32
    %c0_i32_1 = arith.constant 0 : i32
    return %c0_i32, %c0_i32_0 : i32, i32
  }
  func.func @transform_6(%arg0: i32, %arg1: i32) -> (i32, i32) {
    %c0_i32 = arith.constant 0 : i32
    %c0_i32_0 = arith.constant 0 : i32
    return %c0_i32, %arg0 : i32, i32
  }
}

</mosaic_0001>

<bundles_post_ra>
// kernel: tpu_custom_call.1
= control target key start
LH: loop header
LB: loop body
LE: loop exit
PB: predicated region body
PF: predicated region fallthrough
CT: control target
= control target key end

     0   :  { %s2294_s0 = inlined_call_operand.vmem [shape: f32[48,256], index: 0, kind: input, shape index: {}]   ;;  %s2295_s1 = inlined_call_operand.vmem [shape: bf16[256,256], index: 1, kind: input, shape index: {}]   ;;  %s2296_s2 = inlined_call_operand.hbm [shape: f32[48,256], index: 2, kind: input, shape index: {}]   ;;  %s2297_s3 = inlined_call_operand.vmem [shape: f32[96,48], index: 3, kind: input, shape index: {}]   ;;  %s2298_s4 = inlined_call_operand.vmem [shape: f32[96,48], index: 4, kind: input, shape index: {}]   ;;  %s2299_s5 = inlined_call_operand.vmem [shape: f32[96,1], index: 5, kind: input, shape index: {}]   ;;  %s2300_s6 = inlined_call_operand.hbm [shape: f32[48,256], index: 6, kind: output, shape index: {}]  }
   0x1   :  { %2301 = sst [smem:[#allocation10_spill]] %s2295_s1 }
   0x2   :  { %11 = vsyncpa [#allocation5], 0 }
   0x3   :  { %13 = vsyncpa [#allocation5 + $0x1], 0 }
   0x4   :  { %14 = vsyncpa [#allocation6], 0 }
   0x5   :  { %16 = vsyncpa [#allocation6 + $0x1], 0  ;;  %s1818_s21 = smov 0   ;;  %s1820_s22 = smov 0  }
   0x6   :  { %s1822_s23 = smov 0   ;;  %s1824_s24 = smov 0  }
   0x7   :  { %s1826_s25 = smov 0   ;;  %s1828_s26 = smov 0  }
   0x8 LB: > { %s1332_s27 = sadd.s32 4294967295, %s1772_s26   ;;  %s1333_s28 = sadd.s32 4294967294, %s1772_s26   ;;  %s1772_s26 = sphi %s1828_s26, %s22_s26   ;;  %s1768_s25 = sphi %s1826_s25, %s2311_s25   ;;  %s1764_s24 = sphi %s1824_s24, %s2310_s24   ;;  %s1760_s23 = sphi %s1822_s23, %s2309_s23   ;;  %s1756_s22 = sphi %s1820_s22, %s2308_s22   ;;  %s1752_s21 = sphi %s1818_s21, %s2307_s21  }
   0x9   : > { %s34_s29 = sadd.s32 1, %s1768_s25  ;;  %s69_s30 = sadd.s32 1, %s1760_s23 }
   0xa   : > { %p36_p0 = scmp.ge.s32.totalorder %s34_s29, 2  ;;  %p76_p1 = scmp.ne.s32.totalorder %s1760_s23, %s1756_s22 }
   0xb   : > { %p77_p2 = scmp.eq.s32.totalorder %s1772_s26, 0  ;;  %p108_p3 = scmp.ne.s32.totalorder %s1756_s22, %s1752_s21 }
   0xc   : > { %s2313_s29 = smov (%p36_p0, %s34_s29), 0  ;;  %p109_p5 = scmp.eq.s32.totalorder %s1332_s27, 0 }
   0xd   : > { %p1859_p4 = por %p77_p2, %p76_p1  ;;  %s65_s8 = ssub.s32 %s1768_s25, %s2313_s29 }
   0xe   : > { %p195_p6 = scmp.eq.s32.totalorder %s1332_s27, 1  ;;  %p67_p7 = scmp.eq.s32.totalorder %s65_s8, 0 }
   0xf   : > { %p1865_p8 = por %p109_p5, %p108_p3  ;;  %p201_p10 = scmp.eq.s32.totalorder %s1333_s28, 1 }
  0x10   : > { %p1869_p9 = por %p195_p6, %p76_p1  ;;  %p1336_p12 = scmp.ge.s32.totalorder %s1772_s26, 2 }
  0x11   : > { %s1874_s11 = scalar_select %p67_p7, %s1760_s23, %s69_s30  }
  0x12   : > { %p1876_p11 = por %p201_p10, %p108_p3  ;;  %235 = sbr.rel (%p1336_p12) target bundleno = 72 (0x48), region = 32 }
  0x17   : > { %238 = sbr.rel (!%p1859_p4) target bundleno = 54 (0x36), region = 36  ;;  %s240_s13 = sand.u32 (%p1859_p4), 1, %s1760_s23  }
  0x18   : > { %s1338_s14 = sshll.u32 (%p1859_p4), %s1768_s25, 2  ;;  %s1337_s15 = sshll.u32 (%p1859_p4), %s240_s13, 7 }
  0x19   : > { %s2306_s1 = sld [smem:[#allocation10_spill]] (%p1859_p4)  ;;  %s1894_s19 = scalar_lea.vmem (%p1859_p4), [#allocation3], %s1337_s15 }
  0x1f   : > { %s1890_s18 = scalar_lea.vmem %s2306_s1, %s1338_s14 }
  0x20   : > { %v264_v0 = vld [vmem:[%s1890_s18] sm:$0xf]  ;;  %v266_v1 = vld [vmem:[%s1890_s18 + $0x8] sm:$0xf]  ;;  %v268_v2 = vld [vmem:[%s1890_s18 + $0x10] sm:$0xf] }
  0x21   : > { %265 = vst [vmem:[%s1894_s19] sm:$0xf] %v264_v0  ;;  %267 = vst [vmem:[%s1894_s19 + $0x4] sm:$0xf] %v266_v1  ;;  %v270_v3 = vld [vmem:[%s1890_s18 + $0x18] sm:$0xf] }
  0x22   : > { %v272_v4 = vld [vmem:[%s1890_s18 + $0x20] sm:$0xf]  ;;  %269 = vst [vmem:[%s1894_s19 + $0x8] sm:$0xf] %v268_v2  ;;  %271 = vst [vmem:[%s1894_s19 + $0xc] sm:$0xf] %v270_v3 }
  0x23   : > { %273 = vst [vmem:[%s1894_s19 + $0x10] sm:$0xf] %v272_v4  ;;  %v274_v5 = vld [vmem:[%s1890_s18 + $0x28] sm:$0xf]  ;;  %v276_v6 = vld [vmem:[%s1890_s18 + $0x30] sm:$0xf] }
  0x24   : > { %v278_v7 = vld [vmem:[%s1890_s18 + $0x38] sm:$0xf]  ;;  %275 = vst [vmem:[%s1894_s19 + $0x14] sm:$0xf] %v274_v5  ;;  %277 = vst [vmem:[%s1894_s19 + $0x18] sm:$0xf] %v276_v6 }
  0x25   : > { %279 = vst [vmem:[%s1894_s19 + $0x1c] sm:$0xf] %v278_v7  ;;  %v280_v8 = vld [vmem:[%s1890_s18 + $0x40] sm:$0xf]  ;;  %v282_v9 = vld [vmem:[%s1890_s18 + $0x48] sm:$0xf] }
  0x26   : > { %v284_v10 = vld [vmem:[%s1890_s18 + $0x50] sm:$0xf]  ;;  %281 = vst [vmem:[%s1894_s19 + $0x20] sm:$0xf] %v280_v8  ;;  %283 = vst [vmem:[%s1894_s19 + $0x24] sm:$0xf] %v282_v9 }
  0x27   : > { %285 = vst [vmem:[%s1894_s19 + $0x28] sm:$0xf] %v284_v10  ;;  %v286_v11 = vld [vmem:[%s1890_s18 + $0x58] sm:$0xf]  ;;  %v288_v12 = vld [vmem:[%s1890_s18 + $0x60] sm:$0xf] }
  0x28   : > { %v290_v13 = vld [vmem:[%s1890_s18 + $0x68] sm:$0xf]  ;;  %287 = vst [vmem:[%s1894_s19 + $0x2c] sm:$0xf] %v286_v11  ;;  %289 = vst [vmem:[%s1894_s19 + $0x30] sm:$0xf] %v288_v12 }
  0x29   : > { %291 = vst [vmem:[%s1894_s19 + $0x34] sm:$0xf] %v290_v13  ;;  %v292_v14 = vld [vmem:[%s1890_s18 + $0x70] sm:$0xf]  ;;  %v294_v15 = vld [vmem:[%s1890_s18 + $0x78] sm:$0xf] }
  0x2a   : > { %v296_v16 = vld [vmem:[%s1890_s18 + $0x80] sm:$0xf]  ;;  %293 = vst [vmem:[%s1894_s19 + $0x38] sm:$0xf] %v292_v14  ;;  %295 = vst [vmem:[%s1894_s19 + $0x3c] sm:$0xf] %v294_v15 }
  0x2b   : > { %297 = vst [vmem:[%s1894_s19 + $0x40] sm:$0xf] %v296_v16  ;;  %v298_v17 = vld [vmem:[%s1890_s18 + $0x88] sm:$0xf]  ;;  %v300_v18 = vld [vmem:[%s1890_s18 + $0x90] sm:$0xf] }
  0x2c   : > { %v302_v19 = vld [vmem:[%s1890_s18 + $0x98] sm:$0xf]  ;;  %299 = vst [vmem:[%s1894_s19 + $0x44] sm:$0xf] %v298_v17  ;;  %301 = vst [vmem:[%s1894_s19 + $0x48] sm:$0xf] %v300_v18 }
  0x2d   : > { %303 = vst [vmem:[%s1894_s19 + $0x4c] sm:$0xf] %v302_v19  ;;  %v304_v20 = vld [vmem:[%s1890_s18 + $0xa0] sm:$0xf]  ;;  %v306_v21 = vld [vmem:[%s1890_s18 + $0xa8] sm:$0xf] }
  0x2e   : > { %v308_v22 = vld [vmem:[%s1890_s18 + $0xb0] sm:$0xf]  ;;  %305 = vst [vmem:[%s1894_s19 + $0x50] sm:$0xf] %v304_v20  ;;  %307 = vst [vmem:[%s1894_s19 + $0x54] sm:$0xf] %v306_v21 }
  0x2f   : > { %309 = vst [vmem:[%s1894_s19 + $0x58] sm:$0xf] %v308_v22  ;;  %v310_v23 = vld [vmem:[%s1890_s18 + $0xb8] sm:$0xf]  ;;  %v312_v24 = vld [vmem:[%s1890_s18 + $0xc0] sm:$0xf] }
  0x30   : > { %v314_v25 = vld [vmem:[%s1890_s18 + $0xc8] sm:$0xf]  ;;  %311 = vst [vmem:[%s1894_s19 + $0x5c] sm:$0xf] %v310_v23  ;;  %313 = vst [vmem:[%s1894_s19 + $0x60] sm:$0xf] %v312_v24 }
  0x31   : > { %315 = vst [vmem:[%s1894_s19 + $0x64] sm:$0xf] %v314_v25  ;;  %v316_v26 = vld [vmem:[%s1890_s18 + $0xd0] sm:$0xf]  ;;  %v318_v27 = vld [vmem:[%s1890_s18 + $0xd8] sm:$0xf] }
  0x32   : > { %v320_v28 = vld [vmem:[%s1890_s18 + $0xe0] sm:$0xf]  ;;  %317 = vst [vmem:[%s1894_s19 + $0x68] sm:$0xf] %v316_v26  ;;  %319 = vst [vmem:[%s1894_s19 + $0x6c] sm:$0xf] %v318_v27 }
  0x33   : > { %321 = vst [vmem:[%s1894_s19 + $0x70] sm:$0xf] %v320_v28  ;;  %v322_v29 = vld [vmem:[%s1890_s18 + $0xe8] sm:$0xf]  ;;  %v324_v30 = vld [vmem:[%s1890_s18 + $0xf0] sm:$0xf] }
  0x34   : > { %v326_v31 = vld [vmem:[%s1890_s18 + $0xf8] sm:$0xf]  ;;  %323 = vst [vmem:[%s1894_s19 + $0x74] sm:$0xf] %v322_v29  ;;  %325 = vst [vmem:[%s1894_s19 + $0x78] sm:$0xf] %v324_v30 }
  0x35   : > { %327 = vst [vmem:[%s1894_s19 + $0x7c] sm:$0xf] %v326_v31 }
  0x36 PF: > { %s416_s20 = sand.u32 1, %s1760_s23   ;;  %s1339_s27 = sshll.u32 %s1768_s25, 7 }
  0x37   : > { %s1594_s28 = smul.u32 48, %s416_s20  ;;  %s425_s13 = scalar_lea.hbm %s2296_s2, %s1339_s27 }
  0x38   : > { %s417_s16 = scalar_lea.sflag [#allocation5], %s416_s20  ;;  %s1774_s18 = smov [#allocation4]  }
  0x39   : > { %s420_s14 = scalar_lea.vmem [#allocation4], %s1594_s28  ;;  %s1682_s19 = sshll.u32 %s1774_s18, 4  ;;  %s1683_s19 = int_to_ptr.vmem [resolvable:$false] %s1682_s19 }
  0x3a   : > { %s426_s15 = sshll.u32 %s420_s14, 4  ;;  %s1684_s1 = scalar_lea.vmem %s1683_s19, 1536  ;;  %s427_s15 = int_to_ptr.vmem [resolvable:$true] %s426_s15 }
  0x3b   : > { %s1678_s17 = scalar_lea.vmem %s427_s15, 768  ;;  %p1685_p2 = scmp.lt.s32.totalorder %s427_s15, %s1683_s19 }
  0x3c   : > { %p1679_p13 = scmp.ne.s32.totalorder %s427_s15, %s1678_s17  ;;  %p1686_p3 = scmp.lt.s32.totalorder %s1684_s1, %s1678_s17 }
  0x3e   : > { %p1680_p0 = pnand %p1679_p13, %p1859_p4  ;;  %p1687_p5 = por %p1686_p3, %p1685_p2 }
  0x40   : > { %p1681_p1 = pneg %p1680_p0 }
  0x42   : > { %p1688_p6 = pnand %p1687_p5, %p1681_p1 }
  0x44   : > { %1691 = shalt.err (!%p1688_p6)
}
  0x45   : > { %s1775_s30 = smov 256   ;;  %s1776_s27 = smov 128  }
  0x46   : > { %s1777_s28 = smov 8  }
  0x47   : > { %1596 = dma.hbm_to_vmem [thread:$0]  (%p1859_p4), %s425_s13, 768, %s427_s15, %s417_s16, %s1775_s30, %s1776_s27, %s1777_s28  }
  0x48 PF: > { %p1340_p7 = scmp.ge.s32.totalorder %s1772_s26, 1  ;;  %p434_p10 = scmp.lt.s32.totalorder %s1772_s26, 3 }
  0x4a   : > { %p435_p13 = pnand %p1340_p7, %p434_p10 }
  0x4b   : > { %s1970_s20 = sand.u32 (!%p435_p13), 1, %s1756_s22  }
  0x4c   : > { %438 = sbr.rel (%p435_p13) target bundleno = 640 (0x280), region = 81  ;;  %s1341_s1 = sshll.u32 (!%p435_p13), %s1970_s20, 7 }
  0x4d   : > { %s1595_s8 = smul.u32 (!%p435_p13), 48, %s1970_s20  ;;  %s1974_s14 = scalar_lea.vmem (!%p435_p13), [#allocation3], %s1341_s1 }
  0x4e   : > { %s448_s7 = scalar_lea.sflag (!%p435_p13), [#allocation5], %s1970_s20 }
  0x4f   : > { %s1979_s13 = scalar_lea.vmem (!%p435_p13), [#allocation4], %s1595_s8 }
  0x51   : > { %1743 = dma.done.wait (%p1865_p8), %s448_s7, 768  }
  0x52   : > { %1745 = vsyncadd (%p1865_p8), %s448_s7, 4294966528  ;;  %v1447_v32 = vld [vmem:[%s1974_s14 + $0x78] sm:$0xff]   ;;  %v1446_v34 = vld [vmem:[%s1974_s14 + $0x70] sm:$0xff]   ;;  %vm734_vm0 = vcmask 392192   ;;  %v1778_v31 = vmov 0   ;;  %s488_s1 = scalar_lea.vmem [#allocation7], %s1595_s8 }
  0x53   : > { %v1439_v33 = vld [vmem:[%s1974_s14 + $0x38] sm:$0xff]   ;;  %v1431_v35 = vunpack.c.l.bf16 %v1447_v32  ;;  %v1432_v36 = vunpack.c.h.bf16 %v1447_v32  ;;  %v1438_v38 = vld [vmem:[%s1974_s14 + $0x30] sm:$0xff]   ;;  %v1428_v40 = vunpack.c.h.bf16 %v1446_v34  ;;  %v1445_v42 = vld [vmem:[%s1974_s14 + $0x68] sm:$0xff]   ;;  %v1427_v43 = vunpack.c.l.bf16 %v1446_v34  ;;  %1661 = vset.pattern.permute.xlu1 %v1778_v31  ;;  %1660 = vset.pattern.permute.xlu0 %v1778_v31  ;;  %s1366_s7 = sshll.u32 %s1764_s24, 7  ;;  %s1204_s15 = scalar_lea.sflag [#allocation6], %s1970_s20 }
  0x54   : > { %v1400_v37 = vunpack.c.h.bf16 %v1439_v33  ;;  %v1399_v39 = vunpack.c.l.bf16 %v1439_v33  ;;  %v1396_v41 = vunpack.c.h.bf16 %v1438_v38  ;;  %v1437_v44 = vld [vmem:[%s1974_s14 + $0x28] sm:$0xff]   ;;  %v1395_v46 = vunpack.c.l.bf16 %v1438_v38  ;;  %v1444_v49 = vld [vmem:[%s1974_s14 + $0x60] sm:$0xff]   ;;  %v1443_v55 = vld [vmem:[%s1974_s14 + $0x58] sm:$0xff]   ;;  %s2243_s9 = scalar_lea.hbm %s2300_s6, %s1366_s7  ;;  %s1779_s17 = smov [#allocation7]  }
  0x55   : > { %1448 = vmatprep.subr.mxu0 %v1432_v36  ;;  %v513_v45 = vld [vmem:[%s2294_s0 + $0x8] sm:$0xff]  ;;  %v1424_v47 = vunpack.c.h.bf16 %v1445_v42  ;;  %v1392_v48 = vunpack.c.h.bf16 %v1437_v44  ;;  %v1423_v50 = vunpack.c.l.bf16 %v1445_v42  ;;  %v1436_v51 = vld [vmem:[%s1974_s14 + $0x20] sm:$0xff]   ;;  %v1391_v52 = vunpack.c.l.bf16 %v1437_v44  ;;  %v1435_v57 = vld [vmem:[%s1974_s14 + $0x18] sm:$0xff]   ;;  %s1696_s18 = sshll.u32 %s1779_s17, 4  ;;  %s1697_s18 = int_to_ptr.vmem [resolvable:$false] %s1696_s18 }
  0x56   : > { %1449 = vmatpush3.msra.mxu0 %v1400_v37  ;;  %652 = vmatprep.mubr.f32.mxu0 %v513_v45  ;;  %v1420_v53 = vunpack.c.h.bf16 %v1444_v49  ;;  %v1388_v54 = vunpack.c.h.bf16 %v1436_v51  ;;  %v1419_v56 = vunpack.c.l.bf16 %v1444_v49  ;;  %v1387_v58 = vunpack.c.l.bf16 %v1436_v51  ;;  %v1442_v61 = vld [vmem:[%s1974_s14 + $0x50] sm:$0xff]   ;;  %v1441_v3 = vld [vmem:[%s1974_s14 + $0x48] sm:$0xff]   ;;  %v1440_v9 = vld [vmem:[%s1974_s14 + $0x40] sm:$0xff]   ;;  %s1698_s19 = scalar_lea.vmem %s1697_s18, 1536 }
  0x57   : > { %1450 = vmatprep.subr.mxu0 %v1431_v35  ;;  %v1416_v59 = vunpack.c.h.bf16 %v1443_v55  ;;  %v1384_v60 = vunpack.c.h.bf16 %v1435_v57  ;;  %v1415_v62 = vunpack.c.l.bf16 %v1443_v55  ;;  %v1434_v63 = vld [vmem:[%s1974_s14 + $0x10] sm:$0xff]   ;;  %v1383_v0 = vunpack.c.l.bf16 %v1435_v57  ;;  %v1433_v5 = vld [vmem:[%s1974_s14 + $0x8] sm:$0xff]   ;;  %v1370_v11 = vld [vmem:[%s1974_s14] sm:$0xff]   ;;  %s1216_s14 = sshll.u32 %s488_s1, 4  ;;  %s2238_s14 = int_to_ptr.vmem [resolvable:$true] %s1216_s14 }
  0x58   : > { %1451 = vmatpush3.msra.mxu0 %v1399_v39  ;;  %v1412_v1 = vunpack.c.h.bf16 %v1442_v61  ;;  %v1380_v2 = vunpack.c.h.bf16 %v1434_v63  ;;  %v1411_v4 = vunpack.c.l.bf16 %v1442_v61  ;;  %v1379_v6 = vunpack.c.l.bf16 %v1434_v63  ;;  %v512_v17 = vld [vmem:[%s2294_s0] sm:$0xff]  ;;  %v515_v18 = vld [vmem:[%s2294_s0 + $0x18] sm:$0xff]  ;;  %v514_v19 = vld [vmem:[%s2294_s0 + $0x10] sm:$0xff]  ;;  %s1692_s16 = scalar_lea.vmem %s2238_s14, 768  ;;  %p1699_p1 = scmp.lt.s32.totalorder %s2238_s14, %s1697_s18 }
  0x59   : > { %1452 = vmatprep.subr.mxu0 %v1428_v40  ;;  %v1408_v7 = vunpack.c.h.bf16 %v1441_v3  ;;  %v1376_v8 = vunpack.c.h.bf16 %v1433_v5  ;;  %v1407_v10 = vunpack.c.l.bf16 %v1441_v3  ;;  %v1375_v12 = vunpack.c.l.bf16 %v1433_v5  ;;  %v517_v20 = vld [vmem:[%s2294_s0 + $0x28] sm:$0xff]  ;;  %v516_v21 = vld [vmem:[%s2294_s0 + $0x20] sm:$0xff]  ;;  %v519_v22 = vld [vmem:[%s2294_s0 + $0x38] sm:$0xff]  ;;  %p1693_p4 = scmp.ne.s32.totalorder %s2238_s14, %s1692_s16  ;;  %p1700_p2 = scmp.lt.s32.totalorder %s1698_s19, %s1692_s16 }
  0x5a   : > { %1453 = vmatpush3.msra.mxu0 %v1396_v41  ;;  %v1404_v13 = vunpack.c.h.bf16 %v1440_v9  ;;  %v1372_v14 = vunpack.c.h.bf16 %v1370_v11  ;;  %v1403_v15 = vunpack.c.l.bf16 %v1440_v9  ;;  %v1371_v16 = vunpack.c.l.bf16 %v1370_v11  ;;  %v518_v23 = vld [vmem:[%s2294_s0 + $0x30] sm:$0xff]  ;;  %v521_v24 = vld [vmem:[%s2294_s0 + $0x48] sm:$0xff]  ;;  %v520_v25 = vld [vmem:[%s2294_s0 + $0x40] sm:$0xff] }
  0x5b   : > { %1454 = vmatprep.subr.mxu0 %v1427_v43  ;;  %v523_v26 = vld [vmem:[%s2294_s0 + $0x58] sm:$0xff]  ;;  %v522_v27 = vld [vmem:[%s2294_s0 + $0x50] sm:$0xff]  ;;  %v716_v28 = vld [vmem:[%s2298_s4] sm:$0xff]  ;;  %p1694_p8 = pnand %p1693_p4, %p1869_p9  ;;  %p1701_p3 = por %p1700_p2, %p1699_p1 }
  0x5c   : > { %1455 = vmatpush3.msra.mxu0 %v1395_v46  ;;  %1546 = vmatprep.mubr.msk.f32.mxu1 %vm734_vm0, %v716_v28  ;;  %v1065_v29 = vld [vmem:[%s2299_s5 + $0x40] sm:$0xff]  ;;  %v1063_v30 = vld [vmem:[%s2299_s5 + $0x30] sm:$0xff]  ;;  %v1066_v32 = vld [vmem:[%s2299_s5 + $0x48] sm:$0xff] }
  0x5d   : > { %1456 = vmatprep.subr.mxu0 %v1424_v47  ;;  %1111 = vperm.xlu1 %1661, %v1065_v29   ;;  %v1064_v33 = vld [vmem:[%s2299_s5 + $0x38] sm:$0xff]  ;;  %v1067_v35 = vld [vmem:[%s2299_s5 + $0x50] sm:$0xff]  ;;  %v1058_v36 = vld [vmem:[%s2299_s5 + $0x8] sm:$0xff]  ;;  %p1695_p0 = pneg %p1694_p8 }
  0x5e   : > { %1457 = vmatpush3.msra.mxu0 %v1392_v48  ;;  %1101 = vperm.xlu0 %1660, %v1063_v30   ;;  %v1068_v34 = vld [vmem:[%s2299_s5 + $0x58] sm:$0xff]  ;;  %v1057_v37 = vld [vmem:[%s2299_s5] sm:$0xff]  ;;  %v1059_v39 = vld [vmem:[%s2299_s5 + $0x10] sm:$0xff] }
  0x5f   : > { %1458 = vmatprep.subr.mxu0 %v1423_v50  ;;  %v1060_v38 = vld [vmem:[%s2299_s5 + $0x18] sm:$0xff]  ;;  %v1062_v40 = vld [vmem:[%s2299_s5 + $0x28] sm:$0xff]  ;;  %v1061_v41 = vld [vmem:[%s2299_s5 + $0x20] sm:$0xff]  ;;  %p1702_p5 = pnand %p1701_p3, %p1695_p0 }
  0x60   : > { %1459 = vmatpush3.msra.mxu0 %v1391_v52  ;;  %v2081_v61 = vld [vmem:[%s1979_s13 + $0x28] sm:$0xff]  ;;  %v2087_v63 = vld [vmem:[%s1979_s13 + $0x20] sm:$0xff]  ;;  %v2105_v3 = vld [vmem:[%s1979_s13 + $0x10] sm:$0xff] }
  0x61   : > { %1460 = vmatprep.subr.mxu0 %v1420_v53  ;;  %1116 = vperm.xlu1 %1661, %v1066_v32   ;;  %v2115_v5 = vld [vmem:[%s1979_s13 + $0x8] sm:$0xff]  ;;  %v724_v9 = vld [vmem:[%s2298_s4 + $0x40] sm:$0xff]  ;;  %v726_v11 = vld [vmem:[%s2298_s4 + $0x50] sm:$0xff] }
  0x62   : > { %1461 = vmatpush3.msra.mxu0 %v1388_v54  ;;  %1106 = vperm.xlu0 %1660, %v1064_v33  }
  0x63   : > { %1462 = vmatprep.subr.mxu0 %v1419_v56 }
  0x64   : > { %1463 = vmatpush3.msra.mxu0 %v1387_v58 }
  0x65   : > { %1464 = vmatprep.subr.mxu0 %v1416_v59  ;;  %1126 = vperm.xlu1 %1661, %v1068_v34  }
  0x66   : > { %1465 = vmatpush3.msra.mxu0 %v1384_v60  ;;  %1121 = vperm.xlu0 %1660, %v1067_v35   ;;  %v717_v60 = vld [vmem:[%s2298_s4 + $0x8] sm:$0xff] }
  0x67   : > { %1466 = vmatprep.subr.mxu0 %v1415_v62  ;;  %v718_v62 = vld [vmem:[%s2298_s4 + $0x10] sm:$0xff] }
  0x68   : > { %1467 = vmatpush3.msra.mxu0 %v1383_v0  ;;  %v719_v0 = vld [vmem:[%s2298_s4 + $0x18] sm:$0xff] }
  0x69   : > { %1468 = vmatprep.subr.mxu0 %v1412_v1  ;;  %1076 = vperm.xlu1 %1661, %v1058_v36   ;;  %v2097_v1 = vld [vmem:[%s1979_s13 + $0x18] sm:$0xff] }
  0x6a   : > { %1469 = vmatpush3.msra.mxu0 %v1380_v2  ;;  %1071 = vperm.xlu0 %1660, %v1057_v37   ;;  %v720_v2 = vld [vmem:[%s2298_s4 + $0x20] sm:$0xff] }
  0x6b   : > { %1470 = vmatprep.subr.mxu0 %v1411_v4  ;;  %v721_v4 = vld [vmem:[%s2298_s4 + $0x28] sm:$0xff] }
  0x6c   : > { %1471 = vmatpush3.msra.mxu0 %v1379_v6  ;;  %v722_v6 = vld [vmem:[%s2298_s4 + $0x30] sm:$0xff] }
  0x6d   : > { %1472 = vmatprep.subr.mxu0 %v1408_v7  ;;  %1086 = vperm.xlu1 %1661, %v1060_v38   ;;  %v2123_v7 = vld [vmem:[%s1979_s13] sm:$0xff] }
  0x6e   : > { %1473 = vmatpush3.msra.mxu0 %v1376_v8  ;;  %1081 = vperm.xlu0 %1660, %v1059_v39   ;;  %v723_v8 = vld [vmem:[%s2298_s4 + $0x38] sm:$0xff] }
  0x6f   : > { %1474 = vmatprep.subr.mxu0 %v1407_v10  ;;  %v725_v10 = vld [vmem:[%s2298_s4 + $0x48] sm:$0xff] }
  0x70   : > { %1475 = vmatpush3.msra.mxu0 %v1375_v12  ;;  %v727_v12 = vld [vmem:[%s2298_s4 + $0x58] sm:$0xff] }
  0x71   : > { %1476 = vmatprep.subr.mxu0 %v1404_v13  ;;  %1096 = vperm.xlu1 %1661, %v1062_v40   ;;  %v704_v13 = vld [vmem:[%s2297_s3] sm:$0xff] }
  0x72   : > { %1477 = vmatpush3.msra.mxu0 %v1372_v14  ;;  %1091 = vperm.xlu0 %1660, %v1061_v41   ;;  %v705_v14 = vld [vmem:[%s2297_s3 + $0x8] sm:$0xff] }
  0x73   : > { %1478 = vmatprep.subr.mxu0 %v1403_v15  ;;  %v706_v15 = vld [vmem:[%s2297_s3 + $0x10] sm:$0xff] }
  0x74   : > { %1479 = vmatpush3.msra.mxu0 %v1371_v16  ;;  %v707_v16 = vld [vmem:[%s2297_s3 + $0x18] sm:$0xff] }
  0x75   : > { %653 = vmatmul.mubr.f32.vlgmr.msra.gmra.mxu0 %v512_v17  ;;  %v708_v17 = vld [vmem:[%s2297_s3 + $0x20] sm:$0xff] }
  0x76   : > { %657 = vmatprep.mubr.f32.mxu0 %v515_v18  ;;  %v709_v18 = vld [vmem:[%s2297_s3 + $0x28] sm:$0xff] }
  0x79   : > { %658 = vmatmul.mubr.f32.gmra.mxu0 %v514_v19  ;;  %v710_v19 = vld [vmem:[%s2297_s3 + $0x30] sm:$0xff] }
  0x7a   : > { %662 = vmatprep.mubr.f32.mxu0 %v517_v20  ;;  %v711_v20 = vld [vmem:[%s2297_s3 + $0x38] sm:$0xff] }
  0x7d   : > { %663 = vmatmul.mubr.f32.gmra.mxu0 %v516_v21  ;;  %v712_v21 = vld [vmem:[%s2297_s3 + $0x40] sm:$0xff] }
  0x7e   : > { %667 = vmatprep.mubr.f32.mxu0 %v519_v22  ;;  %v713_v22 = vld [vmem:[%s2297_s3 + $0x48] sm:$0xff] }
  0x81   : > { %668 = vmatmul.mubr.f32.gmra.mxu0 %v518_v23  ;;  %v714_v23 = vld [vmem:[%s2297_s3 + $0x50] sm:$0xff] }
  0x82   : > { %672 = vmatprep.mubr.f32.mxu0 %v521_v24  ;;  %v715_v24 = vld [vmem:[%s2297_s3 + $0x58] sm:$0xff] }
  0x85   : > { %673 = vmatmul.mubr.f32.gmra.mxu0 %v520_v25 }
  0x86   : > { %677 = vmatprep.mubr.f32.mxu0 %v523_v26 }
  0x89   : > { %678 = vmatmul.mubr.f32.gmra.mxu0 %v522_v27 }
  0xd8   : > { %v1112_v41 = vpop.permute.xlu1 %1111 }
 0x135   : > { %v1480_v42 = vpop.f32.mrf.mxu0 }
 0x137   : > { %v1481_v43 = vpop.f32.mrf.mxu0 }
 0x138   : > { %v1482_v59 = vadd.f32 %v1481_v43, %v1480_v42  ;;  %v1102_v43 = vpop.permute.xlu0 %1101 }
 0x139   : > { %v1483_v44 = vpop.f32.mrf.mxu0 }
 0x13b   : > { %v1484_v45 = vpop.f32.mrf.mxu0 }
 0x13c   : > { %v1485_v58 = vadd.f32 %v1484_v45, %v1483_v44 }
 0x13d   : > { %v1486_v46 = vpop.f32.mrf.mxu0 }
 0x13f   : > { %v1487_v47 = vpop.f32.mrf.mxu0 }
 0x140   : > { %v1488_v57 = vadd.f32 %v1487_v47, %v1486_v46  ;;  %v1117_v46 = vpop.permute.xlu1 %1116 }
 0x141   : > { %v1489_v48 = vpop.f32.mrf.mxu0 }
 0x143   : > { %v1490_v49 = vpop.f32.mrf.mxu0 }
 0x144   : > { %v1491_v56 = vadd.f32 %v1490_v49, %v1489_v48  ;;  %v1107_v48 = vpop.permute.xlu0 %1106 }
 0x145   : > { %v1492_v50 = vpop.f32.mrf.mxu0 }
 0x147   : > { %v1493_v51 = vpop.f32.mrf.mxu0 }
 0x148   : > { %v1494_v55 = vadd.f32 %v1493_v51, %v1492_v50 }
 0x149   : > { %v1495_v52 = vpop.f32.mrf.mxu0 }
 0x14b   : > { %v1496_v53 = vpop.f32.mrf.mxu0 }
 0x14c   : > { %v1497_v54 = vadd.f32 %v1496_v53, %v1495_v52  ;;  %v1127_v53 = vpop.permute.xlu1 %1126 }
 0x14e   : > { %1534 = vmatprep.subr.mxu1 %v1497_v54 }
 0x14f   : > { %1535 = vmatpush3.msra.mxu1 %v1497_v54 }
 0x150   : > { %1536 = vmatprep.subr.mxu1 %v1494_v55 }
 0x151   : > { %1537 = vmatpush3.msra.mxu1 %v1494_v55 }
 0x152   : > { %1538 = vmatprep.subr.mxu1 %v1491_v56 }
 0x153   : > { %1539 = vmatpush3.msra.mxu1 %v1491_v56 }
 0x154   : > { %1540 = vmatprep.subr.mxu1 %v1488_v57 }
 0x155   : > { %1541 = vmatpush3.msra.mxu1 %v1488_v57 }
 0x156   : > { %1542 = vmatprep.subr.mxu1 %v1485_v58 }
 0x157   : > { %1543 = vmatpush3.msra.mxu1 %v1485_v58 }
 0x158   : > { %1544 = vmatprep.subr.mxu1 %v1482_v59 }
 0x159   : > { %1545 = vmatpush3.msra.mxu1 %v1482_v59 }
 0x15a   : > { %1547 = vmatmul.mubr.msk.f32.vlgmr.msra.gmra.mxu1 %vm734_vm0, %v717_v60  ;;  %1564 = vmatprep.subr.mxu1 %v2081_v61 }
 0x15b   : > { %1565 = vmatpush3.msra.mxu1 %v2081_v61  ;;  %1549 = vmatprep.mubr.msk.f32.mxu1 %vm734_vm0, %v718_v62  ;;  %v1122_v62 = vpop.permute.xlu0 %1121 }
 0x15c   : > { %1566 = vmatprep.subr.mxu1 %v2087_v63 }
 0x15d   : > { %1567 = vmatpush3.msra.mxu1 %v2087_v63 }
 0x15e   : > { %1550 = vmatmul.mubr.msk.f32.gmra.mxu1 %vm734_vm0, %v719_v0  ;;  %1568 = vmatprep.subr.mxu1 %v2097_v1 }
 0x15f   : > { %1552 = vmatprep.mubr.msk.f32.mxu1 %vm734_vm0, %v720_v2  ;;  %1569 = vmatpush3.msra.mxu1 %v2097_v1 }
 0x160   : > { %1570 = vmatprep.subr.mxu1 %v2105_v3 }
 0x161   : > { %1571 = vmatpush3.msra.mxu1 %v2105_v3 }
 0x162   : > { %1553 = vmatmul.mubr.msk.f32.gmra.mxu1 %vm734_vm0, %v721_v4  ;;  %1572 = vmatprep.subr.mxu1 %v2115_v5 }
 0x163   : > { %1555 = vmatprep.mubr.msk.f32.mxu1 %vm734_vm0, %v722_v6  ;;  %1573 = vmatpush3.msra.mxu1 %v2115_v5 }
 0x164   : > { %1574 = vmatprep.subr.mxu1 %v2123_v7 }
 0x165   : > { %1575 = vmatpush3.msra.mxu1 %v2123_v7 }
 0x166   : > { %1556 = vmatmul.mubr.msk.f32.gmra.mxu1 %vm734_vm0, %v723_v8 }
 0x167   : > { %1558 = vmatprep.mubr.msk.f32.mxu1 %vm734_vm0, %v724_v9 }
 0x16a   : > { %1559 = vmatmul.mubr.msk.f32.gmra.mxu1 %vm734_vm0, %v725_v10  ;;  %v1077_v10 = vpop.permute.xlu1 %1076 }
 0x16b   : > { %1561 = vmatprep.mubr.msk.f32.mxu1 %vm734_vm0, %v726_v11 }
 0x16e   : > { %1562 = vmatmul.mubr.msk.f32.gmra.mxu1 %vm734_vm0, %v727_v12 }
 0x16f   : > { %1576 = vmatprep.mubr.msk.f32.mxu1 %vm734_vm0, %v704_v13 }
 0x172   : > { %1577 = vmatmul.mubr.msk.f32.vlgmr.msra.gmra.mxu1 %vm734_vm0, %v705_v14 }
 0x173   : > { %1579 = vmatprep.mubr.msk.f32.mxu1 %vm734_vm0, %v706_v15 }
 0x176   : > { %1580 = vmatmul.mubr.msk.f32.gmra.mxu1 %vm734_vm0, %v707_v16  ;;  %v1072_v16 = vpop.permute.xlu0 %1071 }
 0x177   : > { %1582 = vmatprep.mubr.msk.f32.mxu1 %vm734_vm0, %v708_v17 }
 0x17a   : > { %1583 = vmatmul.mubr.msk.f32.gmra.mxu1 %vm734_vm0, %v709_v18 }
 0x17b   : > { %1585 = vmatprep.mubr.msk.f32.mxu1 %vm734_vm0, %v710_v19 }
 0x17e   : > { %1586 = vmatmul.mubr.msk.f32.gmra.mxu1 %vm734_vm0, %v711_v20 }
 0x17f   : > { %1588 = vmatprep.mubr.msk.f32.mxu1 %vm734_vm0, %v712_v21  ;;  %v1087_v21 = vpop.permute.xlu1 %1086 }
 0x182   : > { %1589 = vmatmul.mubr.msk.f32.gmra.mxu1 %vm734_vm0, %v713_v22 }
 0x183   : > { %1591 = vmatprep.mubr.msk.f32.mxu1 %vm734_vm0, %v714_v23 }
 0x186   : > { %1592 = vmatmul.mubr.msk.f32.gmra.mxu1 %vm734_vm0, %v715_v24 }
 0x21a   : > { %v1548_v25 = vpop.f32.mrf.mxu1 }
 0x21c   : > { %v2199_v26 = vpop.f32.mrf.mxu1 }
 0x21e   : > { %v1551_v27 = vpop.f32.mrf.mxu1 }
 0x220   : > { %v847_v28 = vpop.f32.mrf.mxu1 }
 0x222   : > { %v1554_v29 = vpop.f32.mrf.mxu1 }
 0x224   : > { %v857_v30 = vpop.f32.mrf.mxu1 }
 0x226   : > { %v1557_v31 = vpop.f32.mrf.mxu1 }
 0x228   : > { %v867_v32 = vpop.f32.mrf.mxu1 }
 0x22a   : > { %v1560_v33 = vpop.f32.mrf.mxu1 }
 0x22c   : > { %v877_v34 = vpop.f32.mrf.mxu1 }
 0x22e   : > { %v1563_v35 = vpop.f32.mrf.mxu1 }
 0x230   : > { %v887_v36 = vpop.f32.mrf.mxu1 }
 0x232   : > { %v1578_v37 = vpop.f32.mrf.mxu1 }
 0x234   : > { %v998_v38 = vpop.f32.mrf.mxu1 }
 0x236   : > { %v1581_v39 = vpop.f32.mrf.mxu1 }
 0x237   : > { %v1014_v24 = vadd.f32 %v1581_v39, %v1551_v27 }
 0x238   : > { %v1008_v40 = vpop.f32.mrf.mxu1 }
 0x23a   : > { %v1584_v42 = vpop.f32.mrf.mxu1 }
 0x23c   : > { %v1018_v44 = vpop.f32.mrf.mxu1 }
 0x23e   : > { %v1587_v45 = vpop.f32.mrf.mxu1 }
 0x23f   : > { %v1034_v49 = vadd.f32 %v1587_v45, %v1557_v31  ;;  %v1082_v31 = vpop.permute.xlu0 %1081 }
 0x240   : > { %v1028_v47 = vpop.f32.mrf.mxu1 }
 0x241   : > { %v1029_v54 = vadd.f32 %v1028_v47, %v867_v32  ;;  %v2203_v57 = vadd.f32 %v1107_v48, %v1034_v49  ;;  %v1004_v32 = vadd.f32 %v1578_v37, %v1548_v25 }
 0x242   : > { %v1590_v50 = vpop.f32.mrf.mxu1 }
 0x243   : > { %v1044_v51 = vadd.f32 %v1590_v50, %v1560_v33  ;;  %v2209_v4 = vadd.f32 %v1102_v43, %v1029_v54  ;;  %v1148_v6 = vmul.f32 %v2203_v57, %v2203_v57  ;;  %v1024_v33 = vadd.f32 %v1584_v42, %v1554_v29  ;;  %v1092_v47 = vpop.permute.xlu0 %1091 }
 0x244   : > { %v1038_v52 = vpop.f32.mrf.mxu1  ;;  %v1019_v43 = vadd.f32 %v1018_v44, %v857_v30  ;;  %v1130_v45 = vadd.f32 %v1077_v10, %v1004_v32 }
 0x245   : > { %v2201_v55 = vadd.f32 %v1117_v46, %v1044_v51  ;;  %v1039_v56 = vadd.f32 %v1038_v52, %v877_v34  ;;  %v1147_v15 = vmul.f32 %v2209_v4, %v2209_v4  ;;  %v1009_v34 = vadd.f32 %v1008_v40, %v847_v28 }
 0x246   : > { %v1593_v58 = vpop.f32.mrf.mxu1  ;;  %v1142_v50 = vmul.f32 %v2203_v57, %v1130_v45  ;;  %v1133_v39 = vadd.f32 %v1092_v47, %v1019_v43 }
 0x247   : > { %v2205_v59 = vadd.f32 %v1112_v41, %v1039_v56  ;;  %v1054_v60 = vadd.f32 %v1593_v58, %v1563_v35  ;;  %v1150_v0 = vmul.f32 %v2201_v55, %v2201_v55  ;;  %v1097_v35 = vpop.permute.xlu1 %1096  ;;  %v999_v41 = vadd.f32 %v998_v38, %v2199_v26 }
 0x248   : > { %v1048_v2 = vpop.f32.mrf.mxu1  ;;  %v1134_v46 = vadd.f32 %v1097_v35, %v1024_v33  ;;  %v1131_v49 = vadd.f32 %v1082_v31, %v1009_v34 }
 0x249   : > { %v1140_v8 = vadd.f32 %v1127_v53, %v1054_v60  ;;  %v1049_v9 = vadd.f32 %v1048_v2, %v887_v36  ;;  %v1149_v11 = vmul.f32 %v2205_v59, %v2205_v59  ;;  %v1158_v12 = vadd.f32 %v1150_v0, %v1148_v6 }
 0x24a   : > { %v1132_v36 = vadd.f32 %v1087_v21, %v1014_v24  ;;  %v1129_v27 = vadd.f32 %v1072_v16, %v999_v41  ;;  %v1143_v25 = vmul.f32 %v2205_v59, %v1131_v49 }
 0x24b   : > { %v1152_v13 = vmul.f32 %v1140_v8, %v1140_v8  ;;  %v2215_v14 = vadd.f32 %v1122_v62, %v1049_v9  ;;  %v1157_v19 = vadd.f32 %v1149_v11, %v1147_v15  ;;  %v1146_v51 = vmul.f32 %v1140_v8, %v1134_v46 }
 0x24c   : > { %v1144_v48 = vmul.f32 %v2201_v55, %v1132_v36  ;;  %v1141_v37 = vmul.f32 %v2209_v4, %v1129_v27 }
 0x24d   : > { %v1160_v17 = vadd.f32 %v1158_v12, %v1152_v13  ;;  %v1151_v18 = vmul.f32 %v2215_v14, %v2215_v14  ;;  %v1145_v26 = vmul.f32 %v2215_v14, %v1133_v39 }
 0x24e   : > { %v1154_v29 = vadd.f32 %v1144_v48, %v1142_v50  ;;  %v1153_v40 = vadd.f32 %v1143_v25, %v1141_v37 }
 0x24f   : > { %v1162_v20 = vadd.f32 1e-06, %v1160_v17  ;;  %v1159_v22 = vadd.f32 %v1157_v19, %v1151_v18 }
 0x250   : > { %v1156_v30 = vadd.f32 %v1154_v29, %v1146_v51  ;;  %v1155_v52 = vadd.f32 %v1153_v40, %v1145_v26 }
 0x251   : > { %1662 = vrcp.f32 %v1162_v20  ;;  %v1161_v23 = vadd.f32 1e-06, %v1159_v22 }
 0x252   : > { %v1174_v56 = vmul.f32 0.8, %v1156_v30  ;;  %vm1172_vm1 = vcmp.lt.f32.partialorder %v1156_v30, 0.0  ;;  %v1173_v0 = vmul.f32 0.8, %v1155_v52  ;;  %vm1171_vm2 = vcmp.lt.f32.partialorder %v1155_v52, 0.0 }
 0x253   : > { %1664 = vrcp.f32 %v1161_v23 }
 0x25e   : > { %v1663_v28 = vpop.eup %1662 }
 0x25f   : > { %v1166_v38 = vmul.f32 %v1663_v28, %v1162_v20 }
 0x260   : > { %v1665_v42 = vpop.eup %1664 }
 0x261   : > { %v1168_v44 = vsub.f32 2.0, %v1166_v38  ;;  %v1165_v53 = vmul.f32 %v1665_v42, %v1161_v23 }
 0x263   : > { %v1170_v54 = vmul.f32 %v1663_v28, %v1168_v44  ;;  %v1167_v58 = vsub.f32 2.0, %v1165_v53 }
 0x265   : > { %v1176_v60 = vmul.f32 %v1174_v56, %v1170_v54  ;;  %v1169_v62 = vmul.f32 %v1665_v42, %v1167_v58 }
 0x267   : > { %v1178_v2 = vsel %vm1172_vm1, %v1176_v60, 0.0  ;;  %v1175_v11 = vmul.f32 %v1173_v0, %v1169_v62 }
 0x268   : > { %v1180_v6 = vmul.f32 %v1178_v2, %v2203_v57  ;;  %v1182_v9 = vmul.f32 %v1178_v2, %v2201_v55  ;;  %v1184_v10 = vmul.f32 %v1178_v2, %v1140_v8 }
 0x269   : > { %v1177_v16 = vsel %vm1171_vm2, %v1175_v11, 0.0 }
 0x26a   : > { %v1186_v12 = vsub.f32 %v1130_v45, %v1180_v6  ;;  %v1188_v13 = vsub.f32 %v1132_v36, %v1182_v9  ;;  %v1190_v15 = vsub.f32 %v1134_v46, %v1184_v10  ;;  %v1179_v17 = vmul.f32 %v1177_v16, %v2209_v4 }
 0x26b   : > { %v1181_v18 = vmul.f32 %v1177_v16, %v2205_v59  ;;  %v1183_v19 = vmul.f32 %v1177_v16, %v2215_v14 }
 0x26c   : > { %v1192_v57 = vadd.f32 %v1186_v12, %v2115_v5  ;;  %v1194_v55 = vadd.f32 %v1188_v13, %v2097_v1  ;;  %v1196_v8 = vadd.f32 %v1190_v15, %v2081_v61  ;;  %v1185_v20 = vsub.f32 %v1129_v27, %v1179_v17 }
 0x26d   : > { %v1187_v21 = vsub.f32 %v1131_v49, %v1181_v18  ;;  %v1189_v4 = vsub.f32 %v1133_v39, %v1183_v19 }
 0x26e   : > { %1198 = vst [vmem:[%s488_s1 + $0x8] sm:$0xff] %v1192_v57  ;;  %1200 = vst [vmem:[%s488_s1 + $0x18] sm:$0xff] %v1194_v55  ;;  %v1191_v1 = vadd.f32 %v1185_v20, %v2123_v7 }
 0x26f   : > { %1202 = vst [vmem:[%s488_s1 + $0x28] sm:$0xff] %v1196_v8  ;;  %v1193_v61 = vadd.f32 %v1187_v21, %v2105_v3  ;;  %v1195_v5 = vadd.f32 %v1189_v4, %v2087_v63 }
 0x270   : > { %1197 = vst [vmem:[%s488_s1] sm:$0xff] %v1191_v1 }
 0x271   : > { %1199 = vst [vmem:[%s488_s1 + $0x10] sm:$0xff] %v1193_v61  ;;  %1201 = vst [vmem:[%s488_s1 + $0x20] sm:$0xff] %v1195_v5 }
 0x272   : > { %1705 = shalt.err (!%p1702_p5)
}
 0x273   : > { %s1706_s13 = scalar_lea.hbm %s2243_s9, 768  ;;  %s1710_s28 = scalar_lea.hbm %s2300_s6, 1536 }
 0x274   : > { %p1707_p6 = scmp.ne.s32.totalorder %s2243_s9, %s1706_s13  ;;  %p1711_p13 = scmp.lt.s32.totalorder %s2243_s9, %s2300_s6 }
 0x275   : > { %p1712_p4 = scmp.lt.s32.totalorder %s1710_s28, %s1706_s13 }
 0x276   : > { %p1708_p7 = pnand %p1707_p6, %p1869_p9 }
 0x277   : > { %p1713_p8 = por %p1712_p4, %p1711_p13 }
 0x278   : > { %p1709_p10 = pneg %p1708_p7 }
 0x27a   : > { %p1714_p0 = pnand %p1713_p8, %p1709_p10 }
 0x27c   : > { %1717 = shalt.err (!%p1714_p0)
}
 0x27d   : > { %s1780_s8 = smov 128   ;;  %s1781_s24 = smov 256  }
 0x27e   : > { %s1782_s16 = smov 8  }
 0x27f   : > { %1598 = dma.vmem_to_hbm [thread:$0]  (%p1869_p9), %s2238_s14, 768, %s2243_s9, %s1204_s15, %s1780_s8, %s1781_s24, %s1782_s16  }
 0x280 PF: > { %s1231_s17 = sand.u32 1, %s1752_s21   ;;  %p1601_p1 = pnand %p1336_p12, %p1876_p11 }
 0x281   : > { %s1232_s18 = scalar_lea.sflag [#allocation6], %s1231_s17 }
 0x282   : > { %p1602_p2 = pneg %p1601_p1 }
 0x284   : > { %1747 = dma.done.wait (%p1602_p2), %s1232_s18, 768  }
 0x285   : > { %1749 = vsyncadd (%p1602_p2), %s1232_s18, 4294966528  ;;  %s22_s26 = sadd.s32 1, %s1772_s26   ;;  %s2307_s21 = smov %s1756_s22 }
 0x286   : > { %p19_p3 = scmp.ge.s32.totalorder %s22_s26, 4   ;;  %s2308_s22 = smov %s1760_s23 }
 0x287   : > { %s2309_s23 = smov %s1874_s11  ;;  %s2310_s24 = smov %s1768_s25 }
 0x288   : > { %s2311_s25 = smov %s2313_s29  ;;  %21 = sbr.rel (!%p19_p3) target bundleno = 8 (0x8), region = 149 }
 0x28d   :  { %1237 = vsyncpa [#allocation5], 1 }
 0x28e   :  { %1239 = vsyncpa [#allocation5 + $0x1], 1 }
 0x28f   :  { %1240 = vsyncpa [#allocation6], 1 }
 0x290   :  { %1242 = vsyncpa [#allocation6 + $0x1], 1 }

</bundles_post_ra>
